<compile_context>
chip_gen: v6e
topology: v6e:2x2x1
jax: 0.10.0
libtpu: 0.0.40
codegen_flags: <defaults>
</compile_context>

<pallas_src>
import functools

import jax
import jax.numpy as jnp
from jax.experimental import pallas as pl
from jax.experimental.pallas import tpu as pltpu

LANES = 128
SUBLANES = 8
# 2 MiB per input per pipeline buffer: 2 inputs x 2 buffers = ~8 MiB working
# set, safely under v5e's 16 MiB default scoped VMEM and v7x's 32 MiB scoped /
# 64 MiB physical VMEM, with headroom for the (8,128) accumulator and output.
TILE_BYTES_PER_BUFFER = 2 * 1024 * 1024


def _round_up(x, m):
    return (x + m - 1) // m * m


def _sublane_align(dtype):
    """Second-minor block alignment for a packed dtype (f32->8, bf16->16, i8->32)."""
    return max(SUBLANES, 32 // jnp.dtype(dtype).itemsize)


def _tensorcores_per_device():
    """2 on v7x (two TensorCores per chip); 1 on v5e/v6e and unknown chips."""
    try:
        kind = jax.devices()[0].device_kind.lower()
    except Exception:
        return 1
    return 2 if ("v7" in kind or "7x" in kind) else 1


def _focal_partial_kernel(preds_ref, labels_ref, out_ref, acc_ref, *,
                          tile_rows, tiles_per_core, full_rows, rem_lanes):
    """Accumulates the BCE-with-logits sum of one (tile_rows, 128) block."""
    c = pl.program_id(0)
    t = pl.program_id(1)

    @pl.when(t == 0)
    def _():
        acc_ref[...] = jnp.zeros_like(acc_ref)

    blk = c * tiles_per_core + t          # logical (un-clamped) tile index
    row0 = blk * tile_rows                # first logical row of this tile

    def accumulate(masked):
        x = preds_ref[...].astype(jnp.float32)
        y = labels_ref[...].astype(jnp.float32)
        # Numerically stable BCE-with-logits (PyTorch's formulation):
        #   max(x, 0) - x*y + log1p(exp(-|x|))
        # TODO(synk): if v7x bundle dumps show the single EUP slot binding
        # before HBM, replace log1p(exp(-|x|)) with a polynomial / bf16 EUP
        # evaluation to halve transcendentals per element.
        bce = jnp.maximum(x, 0.0) - x * y + jnp.log1p(jnp.exp(-jnp.abs(x)))
        if masked:
            # Mask logical rows/lanes at or past the true element count; also
            # covers garbage in partially out-of-bounds (padded) blocks.
            lrow = jax.lax.broadcasted_iota(jnp.int32, (tile_rows, LANES), 0)
            grow = row0 + lrow
            valid = grow < full_rows
            if rem_lanes:
                lane = jax.lax.broadcasted_iota(jnp.int32, (tile_rows, LANES), 1)
                valid = valid | ((grow == full_rows) & (lane < rem_lanes))
            bce = jnp.where(valid, bce, 0.0)
        # Lane/sublane-resident accumulation: fold block rows onto the (8, 128)
        # accumulator with plain vreg adds (no cross-lane XLU reduction).
        acc_ref[...] += jnp.sum(
            bce.reshape(tile_rows // SUBLANES, SUBLANES, LANES), axis=0)

    fully_valid = (row0 + tile_rows) <= full_rows

    @pl.when(fully_valid)
    def _():
        accumulate(False)

    @pl.when(jnp.logical_not(fully_valid))
    def _():
        accumulate(True)

    @pl.when(t == pl.num_programs(1) - 1)
    def _():
        out_ref[...] = acc_ref[...]


def _finish(bce_sum, n_elems, alpha, gamma):
    """Scalar epilogue shared by the kernel and the tiny-input fallback."""
    mean_bce = bce_sum / jnp.float32(n_elems)
    logpt = -mean_bce
    pt = jnp.exp(logpt)
    # Guard against (1 - pt) rounding slightly negative when mean BCE ~ 0
    # (float pow of a negative base would be NaN); documented divergence from
    # PyTorch, which would return NaN in that corner.
    one_minus_pt = jnp.maximum(1.0 - pt, 0.0)
    return -(one_minus_pt ** jnp.float32(gamma)) * jnp.float32(alpha) * logpt


def focal_loss(preds, labels, alpha=0.25, gamma=2.0):
    """Scalar focal loss matching FocalLoss(alpha, gamma, weight=None).forward."""
    assert preds.shape == labels.shape
    n_elems = preds.size

    # Native dtype straight into the kernel (no wrapper up-cast, no f32 copy).
    flat_p = preds.reshape(-1)
    flat_l = labels.reshape(-1)

    align = max(_sublane_align(flat_p.dtype), _sublane_align(flat_l.dtype))
    rows_needed = pl.cdiv(n_elems, LANES)

    if rows_needed < align:
        # Tiny input (< ~1-4 KiB): not worth a kernel launch.
        x = flat_p.astype(jnp.float32)
        y = flat_l.astype(jnp.float32)
        bce_sum = jnp.sum(jnp.maximum(x, 0.0) - x * y
                          + jnp.log1p(jnp.exp(-jnp.abs(x))))
        return _finish(bce_sum, n_elems, alpha, gamma)

    rem = n_elems % LANES
    if rem:
        # TODO(synk): this pad copies the inputs in HBM; it is only hit when
        # the element count is not a multiple of 128 (pad values are masked
        # inside the kernel, so zeros are fine for any dtype).
        pad = LANES - rem
        flat_p = jnp.concatenate([flat_p, jnp.zeros((pad,), flat_p.dtype)])
        flat_l = jnp.concatenate([flat_l, jnp.zeros((pad,), flat_l.dtype)])

    rows = flat_p.size // LANES
    p2 = flat_p.reshape(rows, LANES)   # free reshape: lane-dense slab
    l2 = flat_l.reshape(rows, LANES)

    itemsize = max(p2.dtype.itemsize, l2.dtype.itemsize)
    tile_rows_max = max(
        align, (TILE_BYTES_PER_BUFFER // (LANES * itemsize)) // align * align)
    full_rows = n_elems // LANES       # rows whose 128 lanes are all real data
    rem_lanes = n_elems % LANES        # valid lanes in the (single) partial row

    def run(ncores, dim_sems):
        tile_rows = min(tile_rows_max, _round_up(pl.cdiv(rows, ncores), align))
        tile_rows = min(tile_rows, rows // align * align)  # block never exceeds array
        tiles_total = pl.cdiv(rows, tile_rows)
        tiles_per_core = pl.cdiv(tiles_total, ncores)

        kernel = functools.partial(
            _focal_partial_kernel,
            tile_rows=tile_rows, tiles_per_core=tiles_per_core,
            full_rows=full_rows, rem_lanes=rem_lanes)

        # Clamp the block index so phantom (c, t) steps past the last tile
        # re-read an in-bounds tile; their contribution is masked to 0 in the
        # kernel (mask uses the logical, un-clamped tile index).
        in_map = lambda c, t: (jnp.minimum(c * tiles_per_core + t,
                                           tiles_total - 1), 0)

        return pl.pallas_call(
            kernel,
            out_shape=jax.ShapeDtypeStruct((ncores * SUBLANES, LANES),
                                           jnp.float32),
            grid_spec=pltpu.PrefetchScalarGridSpec(
                num_scalar_prefetch=0,
                grid=(ncores, tiles_per_core),
                in_specs=[
                    pl.BlockSpec((tile_rows, LANES), in_map),
                    pl.BlockSpec((tile_rows, LANES), in_map),
                ],
                out_specs=pl.BlockSpec((SUBLANES, LANES), lambda c, t: (c, 0)),
                scratch_shapes=[pltpu.VMEM((SUBLANES, LANES), jnp.float32)],
            ),
            compiler_params=pltpu.CompilerParams(
                dimension_semantics=dim_sems,
            ),
            cost_estimate=pl.CostEstimate(
                flops=6 * n_elems,
                transcendentals=2 * n_elems,
                bytes_accessed=(p2.size * p2.dtype.itemsize
                                + l2.size * l2.dtype.itemsize
                                + ncores * SUBLANES * LANES * 4),
            ),
        )(p2, l2)

    partials = None
    if _tensorcores_per_device() == 2:
        # v7x: only core-parallel semantics reliably shard a grid axis across
        # both TensorCores (~2x HBM bandwidth); fall back if the toolchain
        # rejects it so the kernel always runs.
        try:
            partials = run(2, (pltpu.CORE_PARALLEL, pltpu.ARBITRARY))
        except Exception:
            try:
                partials = run(2, ("parallel", "arbitrary"))
            except Exception:
                partials = None
    if partials is None:
        # Single-TensorCore chips (v5e/v6e): no core axis, no dead padded tile.
        partials = run(1, ("arbitrary", "arbitrary"))

    # Cheap scalar epilogue (combines the per-core (8,128) partial sums).
    return _finish(jnp.sum(partials), n_elems, alpha, gamma)


def focal_loss_ref(preds, labels, alpha=0.25, gamma=2.0):
    x = preds.astype(jnp.float32)
    y = labels.astype(jnp.float32)
    bce = jnp.mean(jnp.maximum(x, 0.0) - x * y + jnp.log1p(jnp.exp(-jnp.abs(x))))
    logpt = -bce
    pt = jnp.exp(logpt)
    return -((1.0 - pt) ** gamma) * alpha * logpt


if __name__ == "__main__":
    key = jax.random.PRNGKey(0)
    k1, k2 = jax.random.split(key)
    # NCHW-style small shapes: batch=2, channels=4, spatial=16x16 -> 2048 elems
    shape = (2, 4, 16, 16)
    preds = jax.random.normal(k1, shape, dtype=jnp.float32)
    labels = (jax.random.uniform(k2, shape) > 0.5).astype(jnp.float32)

    out = focal_loss(preds, labels, alpha=0.25, gamma=2.0)
    out = jax.block_until_ready(out)

    ref = focal_loss_ref(preds, labels, alpha=0.25, gamma=2.0)
    assert jnp.allclose(out, ref, rtol=1e-5, atol=1e-6), (out, ref)
    print("KERNEL_OK")
</pallas_src>

<mosaic_0001>
module attributes {stable_mosaic.version = 11 : i64} {
  func.func @_focal_partial_kernel(%arg0: i32, %arg1: i32, %arg2: memref<16x128xf32, #tpu.memory_space<vmem>>, %arg3: memref<16x128xf32, #tpu.memory_space<vmem>>, %arg4: memref<8x128xf32, #tpu.memory_space<vmem>>, %arg5: memref<8x128xf32, #tpu.memory_space<vmem>>) attributes {dimension_semantics = [#tpu.dimension_semantics<arbitrary>, #tpu.dimension_semantics<arbitrary>], iteration_bounds = array<i64: 1, 1>, scalar_prefetch = 0 : i64, scratch_operands = 1 : i64, tpu.core_type = #tpu.core_type<tc>, window_params = [{transform_indices = @transform_0, window_bounds = array<i64: 16, 128>}, {transform_indices = @transform_1, window_bounds = array<i64: 16, 128>}, {transform_indices = @transform_2, window_bounds = array<i64: 8, 128>}]} {
    %c0_i32 = arith.constant 0 : i32
    %0 = arith.cmpi eq, %arg1, %c0_i32 : i32
    %1 = arith.extui %0 : i1 to i32
    %c0_i32_0 = arith.constant 0 : i32
    %2 = arith.cmpi ne, %1, %c0_i32_0 : i32
    scf.if %2 {
      %cst = arith.constant 0.000000e+00 : f32
      %16 = vector.broadcast %cst : f32 to vector<8x128xf32>
      %c0 = arith.constant 0 : index
      %c0_7 = arith.constant 0 : index
      %17 = vector.load %arg5[%c0, %c0_7] : memref<8x128xf32, #tpu.memory_space<vmem>>, vector<8x128xf32>
      tpu.vector_store %arg5[%c0, %c0_7], %16 {strides = array<i32>} : memref<8x128xf32, #tpu.memory_space<vmem>>, vector<8x128xf32>,
    } else {
    }
    %c1_i32 = arith.constant 1 : i32
    %3 = arith.muli %arg0, %c1_i32 : i32
    %4 = arith.addi %3, %arg1 : i32
    %c16_i32 = arith.constant 16 : i32
    %5 = arith.muli %4, %c16_i32 : i32
    %c16_i32_1 = arith.constant 16 : i32
    %6 = arith.addi %5, %c16_i32_1 : i32
    %c16_i32_2 = arith.constant 16 : i32
    %7 = arith.cmpi sle, %6, %c16_i32_2 : i32
    %8 = arith.extui %7 : i1 to i32
    %c0_i32_3 = arith.constant 0 : i32
    %9 = arith.cmpi ne, %8, %c0_i32_3 : i32
    scf.if %9 {
      %c0 = arith.constant 0 : index
      %c0_7 = arith.constant 0 : index
      %16 = vector.load %arg2[%c0, %c0_7] : memref<16x128xf32, #tpu.memory_space<vmem>>, vector<16x128xf32>
      %c0_8 = arith.constant 0 : index
      %c0_9 = arith.constant 0 : index
      %17 = vector.load %arg3[%c0_8, %c0_9] : memref<16x128xf32, #tpu.memory_space<vmem>>, vector<16x128xf32>
      %cst = arith.constant 0.000000e+00 : f32
      %18 = vector.broadcast %cst : f32 to vector<16x128xf32>
      %19 = arith.maximumf %16, %18 : vector<16x128xf32>
      %20 = arith.mulf %16, %17 : vector<16x128xf32>
      %21 = arith.subf %19, %20 : vector<16x128xf32>
      %22 = math.absf %16 : vector<16x128xf32>
      %cst_10 = arith.constant 0.000000e+00 : f32
      %23 = vector.broadcast %cst_10 : f32 to vector<16x128xf32>
      %24 = arith.subf %23, %22 : vector<16x128xf32>
      %25 = math.exp %24 : vector<16x128xf32>
      %26 = math.log1p %25 : vector<16x128xf32>
      %27 = arith.addf %21, %26 : vector<16x128xf32>
      %c0_11 = arith.constant 0 : index
      %c0_12 = arith.constant 0 : index
      %28 = vector.load %arg5[%c0_11, %c0_12] : memref<8x128xf32, #tpu.memory_space<vmem>>, vector<8x128xf32>
      %29 = vector.shape_cast %27 : vector<16x128xf32> to vector<2x8x128xf32>
      %cst_13 = arith.constant dense<0.000000e+00> : vector<8x128xf32>
      %30 = vector.multi_reduction <add>, %29, %cst_13 [0] : vector<2x8x128xf32> to vector<8x128xf32>
      %31 = arith.addf %28, %30 : vector<8x128xf32>
      %c0_14 = arith.constant 0 : index
      %c0_15 = arith.constant 0 : index
      %32 = vector.load %arg5[%c0_14, %c0_15] : memref<8x128xf32, #tpu.memory_space<vmem>>, vector<8x128xf32>
      tpu.vector_store %arg5[%c0_14, %c0_15], %31 {strides = array<i32>} : memref<8x128xf32, #tpu.memory_space<vmem>>, vector<8x128xf32>,
    } else {
    }
    %true = arith.constant true
    %10 = arith.xori %7, %true : i1
    %11 = arith.extui %10 : i1 to i32
    %c0_i32_4 = arith.constant 0 : i32
    %12 = arith.cmpi ne, %11, %c0_i32_4 : i32
    scf.if %12 {
      %c0 = arith.constant 0 : index
      %c0_7 = arith.constant 0 : index
      %16 = vector.load %arg2[%c0, %c0_7] : memref<16x128xf32, #tpu.memory_space<vmem>>, vector<16x128xf32>
      %c0_8 = arith.constant 0 : index
      %c0_9 = arith.constant 0 : index
      %17 = vector.load %arg3[%c0_8, %c0_9] : memref<16x128xf32, #tpu.memory_space<vmem>>, vector<16x128xf32>
      %cst = arith.constant 0.000000e+00 : f32
      %18 = vector.broadcast %cst : f32 to vector<16x128xf32>
      %19 = arith.maximumf %16, %18 : vector<16x128xf32>
      %20 = arith.mulf %16, %17 : vector<16x128xf32>
      %21 = arith.subf %19, %20 : vector<16x128xf32>
      %22 = math.absf %16 : vector<16x128xf32>
      %cst_10 = arith.constant 0.000000e+00 : f32
      %23 = vector.broadcast %cst_10 : f32 to vector<16x128xf32>
      %24 = arith.subf %23, %22 : vector<16x128xf32>
      %25 = math.exp %24 : vector<16x128xf32>
      %26 = math.log1p %25 : vector<16x128xf32>
      %27 = arith.addf %21, %26 : vector<16x128xf32>
      %28 = tpu.iota {dimensions = array<i32: 0>} : vector<16x128xi32>
      %29 = vector.broadcast %5 : i32 to vector<16x128xi32>
      %30 = arith.addi %29, %28 : vector<16x128xi32>
      %c16_i32_11 = arith.constant 16 : i32
      %31 = vector.broadcast %c16_i32_11 : i32 to vector<16x128xi32>
      %32 = arith.cmpi slt, %30, %31 : vector<16x128xi32>
      %cst_12 = arith.constant 0.000000e+00 : f32
      %33 = vector.broadcast %cst_12 : f32 to vector<16x128xf32>
      %34 = arith.select %32, %27, %33 : vector<16x128xi1>, vector<16x128xf32>
      %c0_13 = arith.constant 0 : index
      %c0_14 = arith.constant 0 : index
      %35 = vector.load %arg5[%c0_13, %c0_14] : memref<8x128xf32, #tpu.memory_space<vmem>>, vector<8x128xf32>
      %36 = vector.shape_cast %34 : vector<16x128xf32> to vector<2x8x128xf32>
      %cst_15 = arith.constant dense<0.000000e+00> : vector<8x128xf32>
      %37 = vector.multi_reduction <add>, %36, %cst_15 [0] : vector<2x8x128xf32> to vector<8x128xf32>
      %38 = arith.addf %35, %37 : vector<8x128xf32>
      %c0_16 = arith.constant 0 : index
      %c0_17 = arith.constant 0 : index
      %39 = vector.load %arg5[%c0_16, %c0_17] : memref<8x128xf32, #tpu.memory_space<vmem>>, vector<8x128xf32>
      tpu.vector_store %arg5[%c0_16, %c0_17], %38 {strides = array<i32>} : memref<8x128xf32, #tpu.memory_space<vmem>>, vector<8x128xf32>,
    } else {
    }
    %c0_i32_5 = arith.constant 0 : i32
    %13 = arith.cmpi eq, %arg1, %c0_i32_5 : i32
    %14 = arith.extui %13 : i1 to i32
    %c0_i32_6 = arith.constant 0 : i32
    %15 = arith.cmpi ne, %14, %c0_i32_6 : i32
    scf.if %15 {
      %c0 = arith.constant 0 : index
      %c0_7 = arith.constant 0 : index
      %16 = vector.load %arg5[%c0, %c0_7] : memref<8x128xf32, #tpu.memory_space<vmem>>, vector<8x128xf32>
      %c0_8 = arith.constant 0 : index
      %c0_9 = arith.constant 0 : index
      %17 = vector.load %arg4[%c0_8, %c0_9] : memref<8x128xf32, #tpu.memory_space<vmem>>, vector<8x128xf32>
      tpu.vector_store %arg4[%c0_8, %c0_9], %16 {strides = array<i32>} : memref<8x128xf32, #tpu.memory_space<vmem>>, vector<8x128xf32>,
    } else {
    }
    return
  }
  func.func @transform_0(%arg0: i32, %arg1: i32) -> (i32, i32) {
    %c1_i32 = arith.constant 1 : i32
    %0 = arith.muli %arg0, %c1_i32 : i32
    %1 = arith.addi %0, %arg1 : i32
    %c0_i32 = arith.constant 0 : i32
    %2 = arith.minsi %1, %c0_i32 : i32
    %c0_i32_0 = arith.constant 0 : i32
    %c0_i32_1 = arith.constant 0 : i32
    return %2, %c0_i32_0 : i32, i32
  }
  func.func @transform_1(%arg0: i32, %arg1: i32) -> (i32, i32) {
    %c1_i32 = arith.constant 1 : i32
    %0 = arith.muli %arg0, %c1_i32 : i32
    %1 = arith.addi %0, %arg1 : i32
    %c0_i32 = arith.constant 0 : i32
    %2 = arith.minsi %1, %c0_i32 : i32
    %c0_i32_0 = arith.constant 0 : i32
    %c0_i32_1 = arith.constant 0 : i32
    return %2, %c0_i32_0 : i32, i32
  }
  func.func @transform_2(%arg0: i32, %arg1: i32) -> (i32, i32) {
    %c0_i32 = arith.constant 0 : i32
    %c0_i32_0 = arith.constant 0 : i32
    return %arg0, %c0_i32 : i32, i32
  }
}

</mosaic_0001>

<bundles_post_ra>
// kernel: tpu_custom_call.1
= control target key start
LH: loop header
LB: loop body
LE: loop exit
PB: predicated region body
PF: predicated region fallthrough
CT: control target
= control target key end

     0   :  { %7 = vsyncpa [#allocation4], 0  ;;  %s303_s0 = inlined_call_operand.hbm [shape: f32[16,128], index: 0, kind: input, shape index: {}]   ;;  %s304_s1 = inlined_call_operand.hbm [shape: f32[16,128], index: 1, kind: input, shape index: {}]   ;;  %s305_s2 = inlined_call_operand.hbm [shape: f32[8,128], index: 2, kind: output, shape index: {}]  }
   0x1   :  { %8 = vsyncpa [#allocation7], 0 }
   0x2   :  { %9 = vsyncpa [#allocation5], 0  ;;  %s274_s9 = smov [#allocation3]  }
   0x3   :  { %s21_s10 = sshll.u32 %s274_s9, 4  ;;  %s22_s10 = int_to_ptr.vmem [resolvable:$true] %s21_s10 }
   0x4   :  { %s216_s11 = scalar_lea.vmem %s22_s10, 256  ;;  %p221_p1 = scmp.lt.s32.totalorder %s22_s10, %s22_s10 }
   0x5   :  { %p217_p0 = scmp.ne.s32.totalorder %s22_s10, %s216_s11  ;;  %p222_p2 = scmp.lt.s32.totalorder %s216_s11, %s216_s11 }
   0x7   :  { %p223_p3 = por %p222_p2, %p221_p1 }
   0x9   :  { %p224_p4 = pnand %p223_p3, %p217_p0 }
   0xb   :  { %227 = shalt.err (!%p224_p4)
}
   0xc   :  { %s275_s12 = smov 128   ;;  %s276_s13 = smov 8  }
   0xd   :  { %27 = dma.hbm_to_vmem [thread:$0]  %s303_s0, 256, %s22_s10, [#allocation4], %s275_s12, %s275_s12, %s276_s13  }
   0xe   :  { %s277_s16 = smov [#allocation6]  }
   0xf   :  { %s39_s17 = sshll.u32 %s277_s16, 4  ;;  %s40_s17 = int_to_ptr.vmem [resolvable:$true] %s39_s17 }
  0x10   :  { %s236_s18 = scalar_lea.vmem %s40_s17, 256  ;;  %p241_p6 = scmp.lt.s32.totalorder %s40_s17, %s40_s17 }
  0x11   :  { %p237_p5 = scmp.ne.s32.totalorder %s40_s17, %s236_s18  ;;  %p242_p7 = scmp.lt.s32.totalorder %s236_s18, %s236_s18 }
  0x13   :  { %p243_p8 = por %p242_p7, %p241_p6 }
  0x15   :  { %p244_p9 = pnand %p243_p8, %p237_p5 }
  0x17   :  { %247 = shalt.err (!%p244_p9)
}
  0x18   :  { %45 = dma.hbm_to_vmem [thread:$0]  %s304_s1, 256, %s40_s17, [#allocation7], %s275_s12, %s275_s12, %s276_s13  }
  0x19   :  { %268 = dma.done.wait [#allocation4], 256  }
  0x1a   :  { %269 = vsyncadd [#allocation4], 4294967040 }
  0x1b   :  { %270 = dma.done.wait [#allocation7], 256  }
  0x1c   :  { %271 = vsyncadd [#allocation7], 4294967040  ;;  %v72_v0 = vld [vmem:[#allocation3] sm:$0xff]  ;;  %v73_v1 = vld [vmem:[#allocation3 + $0x8] sm:$0xff]  ;;  %s278_s0 = smov [#allocation8]  }
  0x1d   :  { %v82_v2 = vand.u32 2147483647, %v72_v0  ;;  %v83_v3 = vand.u32 2147483647, %v73_v1  ;;  %v74_v14 = vld [vmem:[#allocation6] sm:$0xff]  ;;  %v75_v15 = vld [vmem:[#allocation6 + $0x8] sm:$0xff] }
  0x1e   :  { %v76_v17 = vmax.f32 %v72_v0, 0.0  ;;  %v78_v18 = vmul.f32 %v74_v14, %v72_v0  ;;  %v77_v21 = vmax.f32 %v73_v1, 0.0  ;;  %v79_v22 = vmul.f32 %v75_v15, %v73_v1  ;;  %s181_s1 = sshll.u32 %s278_s0, 4  ;;  %s182_s1 = int_to_ptr.vmem [resolvable:$true] %s181_s1 }
  0x1f   :  { %v84_v4 = vsub.f32 0.0, %v82_v2  ;;  %v85_v5 = vsub.f32 0.0, %v83_v3  ;;  %s248_s21 = scalar_lea.vmem %s182_s1, 128  ;;  %p253_p11 = scmp.lt.s32.totalorder %s182_s1, %s182_s1 }
  0x20   :  { %v80_v26 = vsub.f32 %v76_v17, %v78_v18  ;;  %v81_v29 = vsub.f32 %v77_v21, %v79_v22  ;;  %p249_p10 = scmp.ne.s32.totalorder %s182_s1, %s248_s21  ;;  %p254_p12 = scmp.lt.s32.totalorder %s248_s21, %s248_s21 }
  0x21   :  { %v86_v6 = vmul.f32 1.442695, %v84_v4  ;;  %v88_v7 = vmul.f32 1.442695, %v85_v5 }
  0x22   :  { %p255_p13 = por %p254_p12, %p253_p11 }
  0x23   :  { %200 = vpow2.f32 %v86_v6 }
  0x24   :  { %202 = vpow2.f32 %v88_v7  ;;  %p256_p0 = pnand %p255_p13, %p249_p10 }
  0x30   :  { %v201_v8 = vpop.eup %200 }
  0x31   :  { %v203_v9 = vpop.eup %202  ;;  %v90_v10 = vadd.f32 1.0, %v201_v8  ;;  %v93_v12 = vmul.f32 -0.5, %v201_v8  ;;  %v96_v19 = vand.u32 2147483647, %v201_v8 }
  0x32   :  { %v99_v11 = vadd.f32 1.0, %v203_v9  ;;  %v102_v13 = vmul.f32 -0.5, %v203_v9  ;;  %v105_v23 = vand.u32 2147483647, %v203_v9 }
  0x33   :  { %204 = vlog2.f32 %v90_v10  ;;  %v94_v16 = vadd.f32 1.0, %v93_v12  ;;  %vm97_vm0 = vcmp.lt.f32.partialorder %v96_v19, 0.0004427343 }
  0x34   :  { %206 = vlog2.f32 %v99_v11  ;;  %v103_v20 = vadd.f32 1.0, %v102_v13  ;;  %vm106_vm1 = vcmp.lt.f32.partialorder %v105_v23, 0.0004427343 }
  0x35   :  { %v95_v24 = vmul.f32 %v201_v8, %v94_v16 }
  0x36   :  { %v104_v27 = vmul.f32 %v203_v9, %v103_v20 }
  0x40   :  { %v205_v25 = vpop.eup %204 }
  0x41   :  { %v207_v28 = vpop.eup %206  ;;  %v92_v30 = vmul.f32 0.6931472, %v205_v25 }
  0x42   :  { %v101_v31 = vmul.f32 0.6931472, %v207_v28 }
  0x43   :  { %v98_v32 = vsel %vm97_vm0, %v95_v24, %v92_v30 }
  0x44   :  { %v107_v33 = vsel %vm106_vm1, %v104_v27, %v101_v31  ;;  %v108_v34 = vadd.f32 %v98_v32, %v80_v26 }
  0x45   :  { %v109_v35 = vadd.f32 %v107_v33, %v81_v29 }
  0x47   :  { %v111_v36 = vadd.f32 %v109_v35, %v108_v34 }
  0x49   :  { %174 = vst [vmem:[#allocation8] sm:$0xff] %v111_v36 }
  0x4a   :  { %259 = shalt.err (!%p256_p0)
}
  0x4b   :  { %184 = dma.vmem_to_hbm [thread:$0]  %s182_s1, 128, %s305_s2, [#allocation5]  }
  0x4c   :  { %272 = dma.done.wait [#allocation5], 128  }
  0x4d   :  { %273 = vsyncadd [#allocation5], 4294967168 }
  0x4e   :  { %188 = vsyncpa [#allocation4], 1 }
  0x4f   :  { %189 = vsyncpa [#allocation7], 1 }
  0x50   :  { %190 = vsyncpa [#allocation5], 1 }

</bundles_post_ra>
